<compile_context>
chip_gen: v7x
topology: tpu7x:2x2x1
jax: 0.10.0
libtpu: 0.0.40
codegen_flags: <defaults>
</compile_context>

<pallas_src>
import functools

import jax
import jax.numpy as jnp
from jax.experimental import pallas as pl
from jax.experimental.pallas import tpu as pltpu

EPS = 1e-12  # matches the PyTorch module's self.eps (below f32 resolution inside exp)


def _round_up(n: int, m: int) -> int:
    return ((n + m - 1) // m) * m


def _pad_cols(a, width):
    a = a.reshape((-1, a.shape[-1]))
    return jnp.pad(a, ((0, 0), (0, width - a.shape[-1])))


def _vmem_budget_bytes() -> int:
    """Generation-aware scoped-VMEM budget (v7x: 64 MiB/TC, v5e/v6e: 128 MiB)."""
    try:
        cap = int(pltpu.get_tpu_info().vmem_capacity_bytes)
    except Exception:  # not on a TPU (e.g. interpret mode) -> assume v6e-class
        cap = 128 * 1024 * 1024
    return min(64 * 1024 * 1024, max(16 * 1024 * 1024, cap // 2))


def _max_tm_for_vmem(fin: int, fp: int, budget: int, row_tile: int) -> int:
    """Largest row tile (multiple of 16) whose pipeline footprint fits the budget."""
    tm = max(16, _round_up(row_tile, 16))
    while tm > 16:
        io = 2 * tm * (fin + fp) * 4 + 2 * tm * fp * 4 + 2 * tm * 4  # x, z, noise, kl (2 bufs)
        wb = 2 * (fin * 2 * fp * 2 + 2 * fp * 4)                     # packed W (bf16) + b (f32)
        tmp = 8 * tm * fp * 4                                        # out/mean/var/std/... f32 temporaries
        if io + wb + tmp <= budget:
            break
        tm -= 16
    return tm


def _choose_tm(n: int, max_tm: int) -> int:
    """Multiple of 16 that divides n when possible (makes row padding a no-op)."""
    max_tm = max(16, (max_tm // 16) * 16)
    if n % 16 == 0:
        tm = min(max_tm, n)
        tm = (tm // 16) * 16
        while n % tm:
            tm -= 16
        return tm
    return min(max_tm, _round_up(n, 16))


def _vi_kernel(x_ref, w_ref, b_ref, n_ref, z_ref, kl_ref, *, fp):
    """Fused two-head matmul -> (mean, var) -> reparameterized z + per-row KL."""
    # x arrives f32 from HBM; cast in-vreg to bf16 for the MXU (half the HBM traffic
    # of a wrapper-side cast pass).
    x = x_ref[...].astype(jnp.bfloat16)
    out = jnp.dot(x, w_ref[...], preferred_element_type=jnp.float32) + b_ref[...]
    mean = out[:, :fp]
    var = out[:, fp:]
    # One transcendental per element; exp(var + EPS) == std * std with EPS dropped
    # (EPS = 1e-12 is below f32 resolution -> intentional numerical no-op).
    std = jnp.exp(0.5 * var)
    eps = n_ref[...].astype(jnp.float32)
    z_ref[...] = (mean + eps * std).astype(z_ref.dtype)
    # Padded head columns have zero weights/bias -> mean = var = 0, std = 1, so their
    # KL contribution is exactly 0 (do not change the pad value).
    kl_ref[...] = -0.5 * jnp.sum(1.0 + var - mean * mean - std * std,
                                 axis=1, keepdims=True)


def variational_inference(x, w_mean, b_mean, w_var, b_var, noise=None, *,
                          seed=0, row_tile=512, z_dtype=jnp.float32):
    """x: (B, S, Fin); W: (Fin, Fout); b: (Fout,) or (1, Fout); noise: optional (B, S, Fout).

    Returns (z (B, S, Fout), KLd (S,) f32) matching the PyTorch module's forward
    (KLd = -0.5 * sum over batch & feature dims).  If `noise is None`, a deterministic
    bf16 epsilon stream is generated from jax.random.PRNGKey(seed)."""
    B, S, Fin = x.shape
    Fout = w_mean.shape[1]
    N = B * S

    Fp = _round_up(Fout, 128)                      # lane-dense packed head width
    budget = _vmem_budget_bytes()
    TM = _choose_tm(N, _max_tm_for_vmem(Fin, Fp, budget, row_tile))
    Npad = _round_up(N, TM)

    # Pack both heads: columns [0:Fp) -> mean head, [Fp:2Fp) -> var head (zero pad).
    w_packed = jnp.concatenate(
        [_pad_cols(w_mean, Fp), _pad_cols(w_var, Fp)], axis=1).astype(jnp.bfloat16)
    b_packed = jnp.concatenate(
        [_pad_cols(b_mean, Fp), _pad_cols(b_var, Fp)], axis=1).astype(jnp.float32)

    # x stays f32 in HBM (cast happens inside the kernel); row pad only if needed.
    xf = x.reshape(N, Fin)
    if Npad != N:
        xf = jnp.pad(xf, ((0, Npad - N), (0, 0)))

    if noise is None:
        # Generate epsilon directly at the padded lane width in bf16: no extra pad
        # pass, and the noise HBM stream is half-width.  Extra columns multiply
        # std = 1 in zero-padded heads and are sliced off below.
        nf = jax.random.normal(jax.random.PRNGKey(seed), (N, Fp)).astype(jnp.bfloat16)
    else:
        nf = _pad_cols(noise.reshape(N, Fout), Fp)
    if Npad != N:
        nf = jnp.pad(nf, ((0, Npad - N), (0, 0)))

    grid = (Npad // TM,)
    idx_rows = lambda i: (i, 0)
    idx_const = lambda i: (0, 0)     # weights/bias stay resident in VMEM across the grid

    in_specs = [
        pl.BlockSpec((TM, Fin), idx_rows),
        pl.BlockSpec((Fin, 2 * Fp), idx_const),
        pl.BlockSpec((1, 2 * Fp), idx_const),
        pl.BlockSpec((TM, Fp), idx_rows),
    ]
    out_specs = [
        pl.BlockSpec((TM, Fp), idx_rows),
        pl.BlockSpec((TM, 1), idx_rows),   # tiny stream; masked store cost accepted
    ]
    out_shape = (jax.ShapeDtypeStruct((Npad, Fp), z_dtype),
                 jax.ShapeDtypeStruct((Npad, 1), jnp.float32))

    z_pad, kl_row = pl.pallas_call(
        functools.partial(_vi_kernel, fp=Fp),
        out_shape=out_shape,
        grid_spec=pltpu.PrefetchScalarGridSpec(
            num_scalar_prefetch=0, grid=grid,
            in_specs=in_specs, out_specs=out_specs),
        compiler_params=pltpu.CompilerParams(
            dimension_semantics=("parallel",),     # shard row tiles across TCs (v7x)
            vmem_limit_bytes=budget),
    )(xf, w_packed, b_packed, nf)

    # Slices are no-ops when Npad == N and Fout % 128 == 0.
    z = z_pad if (Npad == N and Fp == Fout) else z_pad[:N, :Fout]
    z = z.reshape(B, S, Fout)
    # torch.sum(..., dim=(0, 2)): feature dim reduced in-kernel; tiny batch-dim sum here.
    KLd = kl_row[:N, 0].reshape(B, S).sum(axis=0)
    return z, KLd


def reference(x, w_mean, b_mean, w_var, b_var, noise):
    mean = x @ w_mean + b_mean
    var = x @ w_var + b_var
    KLd = -0.5 * jnp.sum(1.0 + var - mean ** 2 - jnp.exp(var + EPS), axis=(0, 2))
    z = mean + noise * jnp.exp(0.5 * var + EPS)
    return z, KLd


if __name__ == "__main__":
    B, S, Fin, Fout = 2, 8, 32, 32
    key = jax.random.PRNGKey(0)
    kx, kwm, kbm, kwv, kbv, kn = jax.random.split(key, 6)

    bound = 1.0 / (Fin ** 0.5)
    x = jax.random.normal(kx, (B, S, Fin), dtype=jnp.float32)
    w_mean = jax.random.uniform(kwm, (Fin, Fout), jnp.float32, -bound, bound)
    b_mean = jax.random.uniform(kbm, (1, Fout), jnp.float32, -bound, bound)
    w_var = jax.random.uniform(kwv, (Fin, Fout), jnp.float32, -bound, bound)
    b_var = jax.random.uniform(kbv, (1, Fout), jnp.float32, -bound, bound)
    noise = jax.random.normal(kn, (B, S, Fout), dtype=jnp.float32)

    # reference uses the same bf16-rounded operands the kernel feeds the MXU
    rnd = lambda a: a.astype(jnp.bfloat16).astype(jnp.float32)

    # --- path 1: caller-provided f32 noise (bit-checkable against the reference) ---
    z, KLd = variational_inference(x, w_mean, b_mean, w_var, b_var, noise)
    jax.block_until_ready((z, KLd))
    z_ref, KLd_ref = reference(rnd(x), rnd(w_mean), b_mean, rnd(w_var), b_var, noise)
    assert z.shape == (B, S, Fout) and KLd.shape == (S,)
    assert jnp.allclose(z, z_ref, atol=1e-4, rtol=1e-4)
    assert jnp.allclose(KLd, KLd_ref, atol=1e-3, rtol=1e-3)

    # --- path 2: wrapper-generated bf16 noise (deterministic given seed) ---
    seed = 1234
    z2, KLd2 = variational_inference(x, w_mean, b_mean, w_var, b_var, noise=None, seed=seed)
    jax.block_until_ready((z2, KLd2))
    Fp = _round_up(Fout, 128)
    eps2 = jax.random.normal(jax.random.PRNGKey(seed), (B * S, Fp))[:, :Fout]
    noise2 = rnd(eps2).reshape(B, S, Fout)
    z2_ref, _ = reference(rnd(x), rnd(w_mean), b_mean, rnd(w_var), b_var, noise2)
    assert z2.shape == (B, S, Fout) and KLd2.shape == (S,)
    assert jnp.allclose(z2, z2_ref, atol=1e-4, rtol=1e-4)
    # KLd does not depend on the noise, so it must still match the reference
    assert jnp.allclose(KLd2, KLd_ref, atol=1e-3, rtol=1e-3)

    print("KERNEL_OK")
</pallas_src>

<mosaic_0001>
module attributes {stable_mosaic.version = 11 : i64} {
  func.func @_vi_kernel(%arg0: i32, %arg1: memref<16x32xf32, #tpu.memory_space<vmem>>, %arg2: memref<32x256xbf16, #tpu.memory_space<vmem>>, %arg3: memref<1x256xf32, #tpu.memory_space<vmem>>, %arg4: memref<16x128xf32, #tpu.memory_space<vmem>>, %arg5: memref<16x128xf32, #tpu.memory_space<vmem>>, %arg6: memref<16x1xf32, #tpu.memory_space<vmem>>) attributes {dimension_semantics = [#tpu.dimension_semantics<parallel>], iteration_bounds = array<i64: 1>, scalar_prefetch = 0 : i64, scratch_operands = 0 : i64, tpu.core_type = #tpu.core_type<tc>, window_params = [{transform_indices = @transform_0, window_bounds = array<i64: 16, 32>}, {pipeline_mode = #tpu.pipeline_mode<synchronous>, transform_indices = @transform_1, window_bounds = array<i64: 32, 256>}, {pipeline_mode = #tpu.pipeline_mode<synchronous>, transform_indices = @transform_2, window_bounds = array<i64: 1, 256>}, {transform_indices = @transform_3, window_bounds = array<i64: 16, 128>}, {transform_indices = @transform_4, window_bounds = array<i64: 16, 128>}, {transform_indices = @transform_5, window_bounds = array<i64: 16, 1>}]} {
    %c0 = arith.constant 0 : index
    %c0_0 = arith.constant 0 : index
    %0 = vector.load %arg1[%c0, %c0_0] : memref<16x32xf32, #tpu.memory_space<vmem>>, vector<16x32xf32>
    %1 = arith.truncf %0 : vector<16x32xf32> to vector<16x32xbf16>
    %c0_1 = arith.constant 0 : index
    %c0_2 = arith.constant 0 : index
    %2 = vector.load %arg2[%c0_1, %c0_2] : memref<32x256xbf16, #tpu.memory_space<vmem>>, vector<32x256xbf16>
    %cst = arith.constant dense<0.000000e+00> : vector<16x256xf32>
    %3 = tpu.matmul %1, %2, %cst {dimension_numbers = #tpu.dot_dimension_numbers<[1], [0], [0], [1], [0, 0, 1, 1], [], []>} : vector<16x32xbf16>, vector<32x256xbf16>, vector<16x256xf32> -> vector<16x256xf32>
    %c0_3 = arith.constant 0 : index
    %c0_4 = arith.constant 0 : index
    %4 = vector.load %arg3[%c0_3, %c0_4] : memref<1x256xf32, #tpu.memory_space<vmem>>, vector<1x256xf32>
    %5 = vector.broadcast %4 : vector<1x256xf32> to vector<16x256xf32>
    %6 = arith.addf %3, %5 : vector<16x256xf32>
    %7 = vector.extract_strided_slice %6 {offsets = [0, 0], sizes = [16, 128], strides = [1, 1]} : vector<16x256xf32> to vector<16x128xf32>
    %8 = vector.extract_strided_slice %6 {offsets = [0, 128], sizes = [16, 128], strides = [1, 1]} : vector<16x256xf32> to vector<16x128xf32>
    %cst_5 = arith.constant 5.000000e-01 : f32
    %9 = vector.broadcast %cst_5 : f32 to vector<16x128xf32>
    %10 = arith.mulf %9, %8 : vector<16x128xf32>
    %11 = math.exp %10 : vector<16x128xf32>
    %c0_6 = arith.constant 0 : index
    %c0_7 = arith.constant 0 : index
    %12 = vector.load %arg4[%c0_6, %c0_7] : memref<16x128xf32, #tpu.memory_space<vmem>>, vector<16x128xf32>
    %13 = arith.mulf %12, %11 : vector<16x128xf32>
    %14 = arith.addf %7, %13 : vector<16x128xf32>
    %c0_8 = arith.constant 0 : index
    %c0_9 = arith.constant 0 : index
    %15 = vector.load %arg5[%c0_8, %c0_9] : memref<16x128xf32, #tpu.memory_space<vmem>>, vector<16x128xf32>
    tpu.vector_store %arg5[%c0_8, %c0_9], %14 {strides = array<i32>} : memref<16x128xf32, #tpu.memory_space<vmem>>, vector<16x128xf32>,
    %cst_10 = arith.constant 1.000000e+00 : f32
    %16 = vector.broadcast %cst_10 : f32 to vector<16x128xf32>
    %17 = arith.addf %16, %8 : vector<16x128xf32>
    %18 = arith.mulf %7, %7 : vector<16x128xf32>
    %19 = arith.subf %17, %18 : vector<16x128xf32>
    %20 = arith.mulf %11, %11 : vector<16x128xf32>
    %21 = arith.subf %19, %20 : vector<16x128xf32>
    %cst_11 = arith.constant dense<0.000000e+00> : vector<16xf32>
    %22 = vector.multi_reduction <add>, %21, %cst_11 [1] : vector<16x128xf32> to vector<16xf32>
    %23 = vector.shape_cast %22 : vector<16xf32> to vector<16x1xf32>
    %cst_12 = arith.constant -5.000000e-01 : f32
    %24 = vector.broadcast %cst_12 : f32 to vector<16x1xf32>
    %25 = arith.mulf %24, %23 : vector<16x1xf32>
    %c0_13 = arith.constant 0 : index
    %c0_14 = arith.constant 0 : index
    %26 = vector.load %arg6[%c0_13, %c0_14] : memref<16x1xf32, #tpu.memory_space<vmem>>, vector<16x1xf32>
    tpu.vector_store %arg6[%c0_13, %c0_14], %25 {strides = array<i32>} : memref<16x1xf32, #tpu.memory_space<vmem>>, vector<16x1xf32>,
    return
  }
  func.func @transform_0(%arg0: i32) -> (i32, i32) {
    %c0_i32 = arith.constant 0 : i32
    %c0_i32_0 = arith.constant 0 : i32
    return %arg0, %c0_i32 : i32, i32
  }
  func.func @transform_1(%arg0: i32) -> (i32, i32) {
    %c0_i32 = arith.constant 0 : i32
    %c0_i32_0 = arith.constant 0 : i32
    %c0_i32_1 = arith.constant 0 : i32
    return %c0_i32, %c0_i32_0 : i32, i32
  }
  func.func @transform_2(%arg0: i32) -> (i32, i32) {
    %c0_i32 = arith.constant 0 : i32
    %c0_i32_0 = arith.constant 0 : i32
    %c0_i32_1 = arith.constant 0 : i32
    return %c0_i32, %c0_i32_0 : i32, i32
  }
  func.func @transform_3(%arg0: i32) -> (i32, i32) {
    %c0_i32 = arith.constant 0 : i32
    %c0_i32_0 = arith.constant 0 : i32
    return %arg0, %c0_i32 : i32, i32
  }
  func.func @transform_4(%arg0: i32) -> (i32, i32) {
    %c0_i32 = arith.constant 0 : i32
    %c0_i32_0 = arith.constant 0 : i32
    return %arg0, %c0_i32 : i32, i32
  }
  func.func @transform_5(%arg0: i32) -> (i32, i32) {
    %c0_i32 = arith.constant 0 : i32
    %c0_i32_0 = arith.constant 0 : i32
    return %arg0, %c0_i32 : i32, i32
  }
}

</mosaic_0001>

<bundles_post_ra>
// kernel: tpu_custom_call.1
= control target key start
LH: loop header
LB: loop body
LE: loop exit
PB: predicated region body
PF: predicated region fallthrough
CT: control target
= control target key end

     0   :  { %11 = vsyncpa [#allocation3], 0  ;;  %s535_s0 = inlined_call_operand.hbm [shape: f32[16,32], index: 0, kind: input, shape index: {}]   ;;  %s536_s1 = inlined_call_operand.hbm [shape: bf16[32,256], index: 1, kind: input, shape index: {}]   ;;  %s537_s2 = inlined_call_operand.hbm [shape: f32[1,256], index: 2, kind: input, shape index: {}]   ;;  %s538_s3 = inlined_call_operand.hbm [shape: f32[16,128], index: 3, kind: input, shape index: {}]   ;;  %s539_s4 = inlined_call_operand.hbm [shape: f32[16,128], index: 4, kind: output, shape index: {0}]   ;;  %s540_s5 = inlined_call_operand.hbm [shape: f32[16,1], index: 5, kind: output, shape index: {1}]  }
   0x1   :  { %12 = vsyncpa [#allocation6], 0 }
   0x2   :  { %13 = vsyncpa [#allocation9], 0 }
   0x3   :  { %14 = vsyncpa [#allocation4], 0 }
   0x4   :  { %15 = vsyncpa [#allocation12], 0  ;;  %s395_s18 = smov [#allocation5]   ;;  %s396_s20 = smov [#allocation2]  }
   0x5   :  { %s33_s19 = sshll.u32 %s395_s18, 4  ;;  %s21_s21 = sshll.u32 %s396_s20, 4  ;;  %s34_s19 = int_to_ptr.vmem [resolvable:$true] %s33_s19  ;;  %s434_s21 = int_to_ptr.vmem [resolvable:$true] %s21_s21 }
   0x6   :  { %s253_s24 = scalar_lea.hbm %s536_s1, 512 }
   0x7   :  { %p254_p0 = scmp.ne.s32.totalorder %s536_s1, %s253_s24  ;;  %p257_p1 = scmp.lt.u32.totalorder %s253_s24, %s536_s1 }
   0x9   :  { %p259_p2 = pnand %p257_p1, %p254_p0 }
   0xb   :  { %262 = shalt.err (!%p259_p2)
}
   0xc   :  { %s263_s29 = scalar_lea.vmem %s34_s19, 512  ;;  %p268_p4 = scmp.lt.s32.totalorder %s34_s19, %s34_s19 }
   0xd   :  { %p264_p3 = scmp.ne.s32.totalorder %s34_s19, %s263_s29  ;;  %p269_p5 = scmp.lt.s32.totalorder %s263_s29, %s263_s29 }
   0xf   :  { %p270_p6 = por %p269_p5, %p268_p4 }
  0x11   :  { %p271_p7 = pnand %p270_p6, %p264_p3 }
  0x13   :  { %274 = shalt.err (!%p271_p7)
}
  0x14   :  { %s397_s30 = smov 128   ;;  %s398_s6 = smov 8  }
  0x15   :  { %39 = dma.hbm_to_vmem [thread:$0]  %s536_s1, 512, %s34_s19, [#allocation6], %s397_s30, %s397_s30, %s398_s6  }
  0x16   :  { %s275_s11 = scalar_lea.hbm %s535_s0, 256 }
  0x17   :  { %p276_p8 = scmp.ne.s32.totalorder %s535_s0, %s275_s11  ;;  %p279_p9 = scmp.lt.u32.totalorder %s275_s11, %s535_s0 }
  0x19   :  { %p281_p10 = pnand %p279_p9, %p276_p8 }
  0x1b   :  { %284 = shalt.err (!%p281_p10)
}
  0x1c   :  { %s285_s16 = scalar_lea.vmem %s434_s21, 256  ;;  %p290_p12 = scmp.lt.s32.totalorder %s434_s21, %s434_s21 }
  0x1d   :  { %p286_p11 = scmp.ne.s32.totalorder %s434_s21, %s285_s16  ;;  %p291_p13 = scmp.lt.s32.totalorder %s285_s16, %s285_s16 }
  0x1f   :  { %p292_p0 = por %p291_p13, %p290_p12 }
  0x21   :  { %p293_p1 = pnand %p292_p0, %p286_p11 }
  0x23   :  { %296 = shalt.err (!%p293_p1)
}
  0x24   :  { %27 = dma.hbm_to_vmem [thread:$0]  %s535_s0, 256, %s434_s21, [#allocation3], %s397_s30, %s397_s30, %s398_s6  }
  0x25   :  { %s399_s18 = smov [#allocation7]   ;;  %s400_s20 = smov [#allocation8]  }
  0x26   :  { %s46_s19 = sshll.u32 %s399_s18, 4  ;;  %s55_s22 = sshll.u32 %s400_s20, 4  ;;  %s47_s19 = int_to_ptr.vmem [resolvable:$true] %s46_s19  ;;  %s471_s22 = int_to_ptr.vmem [resolvable:$true] %s55_s22 }
  0x27   :  { %s297_s25 = scalar_lea.hbm %s537_s2, 32 }
  0x28   :  { %p298_p2 = scmp.ne.s32.totalorder %s537_s2, %s297_s25  ;;  %p301_p3 = scmp.lt.u32.totalorder %s297_s25, %s537_s2 }
  0x2a   :  { %p303_p4 = pnand %p301_p3, %p298_p2 }
  0x2c   :  { %306 = shalt.err (!%p303_p4)
}
  0x2d   :  { %s307_s0 = scalar_lea.vmem %s47_s19, 32  ;;  %p312_p6 = scmp.lt.s32.totalorder %s47_s19, %s47_s19 }
  0x2e   :  { %p308_p5 = scmp.ne.s32.totalorder %s47_s19, %s307_s0  ;;  %p313_p7 = scmp.lt.s32.totalorder %s307_s0, %s307_s0 }
  0x30   :  { %p314_p8 = por %p313_p7, %p312_p6 }
  0x32   :  { %p315_p9 = pnand %p314_p8, %p308_p5 }
  0x34   :  { %318 = shalt.err (!%p315_p9)
}
  0x35   :  { %49 = dma.hbm_to_vmem [thread:$0]  %s537_s2, 32, %s47_s19, [#allocation6]  }
  0x36   :  { %s319_s10 = scalar_lea.hbm %s538_s3, 256 }
  0x37   :  { %p320_p10 = scmp.ne.s32.totalorder %s538_s3, %s319_s10  ;;  %p323_p11 = scmp.lt.u32.totalorder %s319_s10, %s538_s3 }
  0x39   :  { %p325_p12 = pnand %p323_p11, %p320_p10 }
  0x3b   :  { %328 = shalt.err (!%p325_p12)
}
  0x3c   :  { %s329_s15 = scalar_lea.vmem %s471_s22, 256  ;;  %p334_p0 = scmp.lt.s32.totalorder %s471_s22, %s471_s22 }
  0x3d   :  { %p330_p13 = scmp.ne.s32.totalorder %s471_s22, %s329_s15  ;;  %p335_p1 = scmp.lt.s32.totalorder %s329_s15, %s329_s15 }
  0x3f   :  { %p336_p2 = por %p335_p1, %p334_p0 }
  0x41   :  { %p337_p3 = pnand %p336_p2, %p330_p13 }
  0x43   :  { %340 = shalt.err (!%p337_p3)
}
  0x44   :  { %61 = dma.hbm_to_vmem [thread:$0]  %s538_s3, 256, %s471_s22, [#allocation9], %s397_s30, %s397_s30, %s398_s6  }
  0x45   :  { %385 = dma.done.wait [#allocation3], 256  }
  0x46   :  { %386 = vsyncadd [#allocation3], 4294967040 }
  0x47   :  { %387 = dma.done.wait [#allocation6], 544  }
  0x48   :  { %388 = vsyncadd [#allocation6], 4294966752 }
  0x49   :  { %389 = dma.done.wait [#allocation9], 256  }
  0x4a   :  { %390 = vsyncadd [#allocation9], 4294967040  ;;  %v401_v0 = vmov 0   ;;  %v243_v1 = vld [vmem:[#allocation5 + $0x4] ss:$8 sps:$4 sm:$0xff]   ;;  %v75_v5 = vld [vmem:[#allocation2] sm:$0xff]  ;;  %v84_v8 = vlaneseq }
  0x4b   :  { %150 = vmatprep.mubr.bf16.mxu0 %v401_v0  ;;  %v245_v2 = vld [vmem:[#allocation5] ss:$8 sps:$4 sm:$0xff]   ;;  %118 = vmatprep.subr.bf16.mxu0 %v243_v1  ;;  %v246_v3 = vld [vmem:[#allocation5 + $0x14] ss:$8 sps:$4 sm:$0xff]   ;;  %v248_v4 = vld [vmem:[#allocation5 + $0x10] ss:$8 sps:$4 sm:$0xff]  }
  0x4c   :  { %119 = vmatpush1.bf16.msra.mxu0 %v245_v2  ;;  %v76_v6 = vld [vmem:[#allocation2 + $0x8] sm:$0xff]  ;;  %vm114_vm0 = vcmask 261120   ;;  %v85_v9 = vshrl.u32 %v84_v8, 7  ;;  %v82_v11 = vld [vmem:[#allocation7] sm:$0x3]  ;;  %v167_v33 = vld [vmem:[#allocation8] sm:$0xff] }
  0x4d   :  { %120 = vmatprep.subr.bf16.mxu0 %v246_v3  ;;  %v77_v7 = vpack.c.bf16 %v76_v6, %v75_v5  ;;  %v168_v35 = vld [vmem:[#allocation8 + $0x8] sm:$0xff]  ;;  %s402_s3 = smov [#allocation10]  }
  0x4e   :  { %v86_v10 = vsub.s32 0, %v85_v9  ;;  %v90_v12 = vsub.s32 1, %v85_v9  ;;  %s199_s1 = sshll.u32 %s402_s3, 4  ;;  %s200_s1 = int_to_ptr.vmem [resolvable:$true] %s199_s1 }
  0x4f   :  { %s341_s17 = scalar_lea.vmem %s200_s1, 256  ;;  %p346_p5 = scmp.lt.s32.totalorder %s200_s1, %s200_s1 }
  0x50   :  { %121 = vmatpush1.bf16.msra.mxu0 %v248_v4  ;;  %v87_v13 = vrot.slane %v82_v11, %v86_v10  ;;  %v91_v14 = vrot.slane %v82_v11, %v90_v12  ;;  %p342_p4 = scmp.ne.s32.totalorder %s200_s1, %s341_s17  ;;  %p347_p6 = scmp.lt.s32.totalorder %s341_s17, %s341_s17 }
  0x52   :  { %p348_p7 = por %p347_p6, %p346_p5 }
  0x53   :  { %233 = vmatmul.mubr.msk.bf16.vlgmr.msra.gmra.mrb[0].mxu0 %vm114_vm0, %v77_v7 }
  0x54   :  { %p349_p8 = pnand %p348_p7, %p342_p4 }
 0x126   :  { %v152_v15 = vpop.f32.mrb[0].mxu0 }
 0x127   :  { %v153_v16 = vadd.f32 %v152_v15, %v87_v13  ;;  %v154_v17 = vpop.f32.mrb[1].mxu0 }
 0x128   :  { %v155_v18 = vadd.f32 %v154_v17, %v91_v14  ;;  %v156_v19 = vpop.f32.mrb[2].mxu0 }
 0x129   :  { %v177_v20 = vmul.f32 %v153_v16, %v153_v16  ;;  %v157_v21 = vadd.f32 %v156_v19, %v87_v13  ;;  %v158_v22 = vpop.f32.mrb[3].mxu0 }
 0x12a   :  { %v161_v23 = vmul.f32 0.5, %v155_v18  ;;  %v175_v24 = vadd.f32 1.0, %v155_v18  ;;  %v159_v25 = vadd.f32 %v158_v22, %v91_v14 }
 0x12b   :  { %v178_v26 = vmul.f32 %v157_v21, %v157_v21 }
 0x12c   :  { %v163_v27 = vmul.f32 1.442695, %v161_v23  ;;  %v162_v28 = vmul.f32 0.5, %v159_v25  ;;  %v176_v29 = vadd.f32 1.0, %v159_v25  ;;  %v179_v30 = vsub.f32 %v175_v24, %v177_v20 }
 0x12e   :  { %249 = vpow2.f32 %v163_v27  ;;  %v165_v31 = vmul.f32 1.442695, %v162_v28  ;;  %v180_v32 = vsub.f32 %v176_v29, %v178_v26 }
 0x130   :  { %251 = vpow2.f32 %v165_v31 }
 0x138   :  { %v250_v34 = vpop.eup %249 }
 0x139   :  { %v181_v36 = vmul.f32 %v250_v34, %v250_v34  ;;  %v169_v37 = vmul.f32 %v250_v34, %v167_v33 }
 0x13a   :  { %v252_v38 = vpop.eup %251 }
 0x13b   :  { %v183_v39 = vsub.f32 %v179_v30, %v181_v36  ;;  %v182_v40 = vmul.f32 %v252_v38, %v252_v38  ;;  %v170_v41 = vmul.f32 %v252_v38, %v168_v35  ;;  %v171_v42 = vadd.f32 %v169_v37, %v153_v16 }
 0x13d   :  { %185 = vadd.xlane.f32.xlu0 %v183_v39  ;;  %v184_v43 = vsub.f32 %v180_v32, %v182_v40  ;;  %v172_v44 = vadd.f32 %v170_v41, %v157_v21  ;;  %173 = vst [vmem:[#allocation10] sm:$0xff] %v171_v42 }
 0x13f   :  { %174 = vst [vmem:[#allocation10 + $0x8] sm:$0xff] %v172_v44 }
 0x141   :  { %187 = vadd.xlane.f32.xlu0 %v184_v43 }
 0x142   :  { %352 = shalt.err (!%p349_p8)
}
 0x143   :  { %s353_s20 = scalar_lea.hbm %s539_s4, 256 }
 0x144   :  { %p354_p9 = scmp.ne.s32.totalorder %s539_s4, %s353_s20  ;;  %p357_p10 = scmp.lt.u32.totalorder %s353_s20, %s539_s4 }
 0x146   :  { %p359_p11 = pnand %p357_p10, %p354_p9 }
 0x148   :  { %362 = shalt.err (!%p359_p11)
}
 0x149   :  { %205 = dma.vmem_to_hbm [thread:$0]  %s200_s1, 256, %s539_s4, [#allocation4], %s397_s30, %s397_s30, %s398_s6   ;;  %vm191_vm1 = vcmask 7168  }
 0x14a   :  { %s403_s28 = smov [#allocation11]  }
 0x14b   :  { %s211_s29 = sshll.u32 %s403_s28, 4  ;;  %s212_s29 = int_to_ptr.vmem [resolvable:$true] %s211_s29 }
 0x14c   :  { %s363_s0 = scalar_lea.vmem %s212_s29, 256  ;;  %p368_p13 = scmp.lt.s32.totalorder %s212_s29, %s212_s29 }
 0x14d   :  { %p364_p12 = scmp.ne.s32.totalorder %s212_s29, %s363_s0  ;;  %p369_p0 = scmp.lt.s32.totalorder %s363_s0, %s363_s0 }
 0x14f   :  { %p370_p1 = por %p369_p0, %p368_p13 }
 0x151   :  { %p371_p2 = pnand %p370_p1, %p364_p12 }
 0x1ca   :  { %v186_v45 = vpop.xlane.xlu0 %185 }
 0x1cb   :  { %v189_v46 = vmul.f32 -0.5, %v186_v45 }
 0x1cd   :  { %192 = vst.msk [vmem:[#allocation11] sm:$0xff] %vm191_vm1, %v189_v46 }
 0x1ce   :  { %v188_v47 = vpop.xlane.xlu0 %187 }
 0x1cf   :  { %v190_v48 = vmul.f32 -0.5, %v188_v47 }
 0x1d1   :  { %193 = vst.msk [vmem:[#allocation11 + $0x8] sm:$0xff] %vm191_vm1, %v190_v48 }
 0x1d2   :  { %374 = shalt.err (!%p371_p2)
}
 0x1d3   :  { %s375_s4 = scalar_lea.hbm %s540_s5, 256 }
 0x1d4   :  { %p376_p3 = scmp.ne.s32.totalorder %s540_s5, %s375_s4  ;;  %p379_p4 = scmp.lt.u32.totalorder %s375_s4, %s540_s5 }
 0x1d6   :  { %p381_p5 = pnand %p379_p4, %p376_p3 }
 0x1d8   :  { %384 = shalt.err (!%p381_p5)
}
 0x1d9   :  { %217 = dma.vmem_to_hbm [thread:$0]  %s212_s29, 256, %s540_s5, [#allocation12], %s397_s30, %s397_s30, %s398_s6  }
 0x1da   :  { %391 = dma.done.wait [#allocation4], 256  }
 0x1db   :  { %392 = vsyncadd [#allocation4], 4294967040 }
 0x1dc   :  { %393 = dma.done.wait [#allocation12], 256  }
 0x1dd   :  { %394 = vsyncadd [#allocation12], 4294967040 }
 0x1de   :  { %224 = vsyncpa [#allocation3], 1 }
 0x1df   :  { %225 = vsyncpa [#allocation6], 1 }
 0x1e0   :  { %226 = vsyncpa [#allocation9], 1 }
 0x1e1   :  { %227 = vsyncpa [#allocation4], 1 }
 0x1e2   :  { %228 = vsyncpa [#allocation12], 1 }

</bundles_post_ra>
